<compile_context>
chip_gen: v7x
topology: tpu7x:2x2x1
jax: 0.10.0
libtpu: 0.0.40
codegen_flags: <defaults>
</compile_context>

<pallas_src>
import math
import numpy as np
import jax
import jax.numpy as jnp
from jax.experimental import pallas as pl
from jax.experimental.pallas import tpu as pltpu

WINDOW_SIZE = 11
SIGMA = 1.5
PAD = WINDOW_SIZE // 2
C1 = 0.01 ** 2
C2 = 0.03 ** 2


def _gauss_1d(window_size=WINDOW_SIZE, sigma=SIGMA):
    g = np.array(
        [math.exp(-((x - window_size // 2) ** 2) / float(2 * sigma ** 2))
         for x in range(window_size)],
        dtype=np.float32,
    )
    return (g / g.sum()).astype(np.float32)


_G1D = _gauss_1d()
_WINDOW = np.outer(_G1D, _G1D).astype(np.float32)  # (11, 11), for the reference


def _band_matrix(n):
    """Banded Toeplitz M (n, n): (X @ M)[y, i] = sum_d g[d+PAD] * X[y, i+d]
    with implicit zero padding at the borders (== F.conv2d padding=PAD).
    Symmetric, so the same matrix serves the column pass (M @ X)."""
    m = np.zeros((n, n), dtype=np.float32)
    for i in range(n):
        for d in range(-PAD, PAD + 1):
            j = i + d
            if 0 <= j < n:
                m[j, i] = _G1D[d + PAD]
    return m


def _block_diag_band(n, reps):
    """Block-diagonal band for `reps` planes packed along the lane axis; the
    block structure also gives each packed plane its own zero-pad boundary."""
    return np.kron(np.eye(reps, dtype=np.float32), _band_matrix(n))


def _make_ssim_kernel(H, LPW):
    def kernel(x1_ref, x2_ref, gw_ref, gh_ref, o_ref):
        # x1_ref/x2_ref: (1, H, LPW) f32 — LP planes packed along lanes.
        # gw_ref: (LPW, LPW) block-diag band (along-W pass, applied on the right)
        # gh_ref: (H, H) band (along-H pass, applied on the left)
        # o_ref : (1, 1, LPW) — per-lane column sums of the SSIM map.
        a = x1_ref[0]                                   # (H, LPW)
        b = x2_ref[0]

        # All five statistic planes, formed once, stacked along the row axis.
        stats = jnp.concatenate([a, b, a * a, b * b, a * b], axis=0)   # (5H, LPW)

        # Row pass (conv along W) — one MXU matmul for all stats / planes.
        t = jnp.dot(stats, gw_ref[...], preferred_element_type=jnp.float32)

        # Column pass (conv along H) — re-stack the 5 stats along the lane axis
        # so GH is applied in a single wide matmul.
        wide = jnp.concatenate([t[i * H:(i + 1) * H] for i in range(5)],
                               axis=1)                                  # (H, 5*LPW)
        c = jnp.dot(gh_ref[...], wide, preferred_element_type=jnp.float32)

        mu1 = c[:, 0 * LPW:1 * LPW]
        mu2 = c[:, 1 * LPW:2 * LPW]
        s11 = c[:, 2 * LPW:3 * LPW]
        s22 = c[:, 3 * LPW:4 * LPW]
        s12 = c[:, 4 * LPW:5 * LPW]

        mu1_sq = mu1 * mu1
        mu2_sq = mu2 * mu2
        mu1_mu2 = mu1 * mu2
        sigma1_sq = s11 - mu1_sq
        sigma2_sq = s22 - mu2_sq
        sigma12 = s12 - mu1_mu2

        ssim_map = ((2.0 * mu1_mu2 + C1) * (2.0 * sigma12 + C2)) / (
            (mu1_sq + mu2_sq + C1) * (sigma1_sq + sigma2_sq + C2)
        )
        # Single lane-dense store per grid step; wrapper finishes the mean.
        o_ref[0] = jnp.sum(ssim_map, axis=0, keepdims=True)            # (1, LPW)

    return kernel


def _estimate_vmem_bytes(H, LPW):
    img_blocks = 2 * 2 * H * LPW * 4          # 2 inputs x double buffer
    bands = 2 * (LPW * LPW + H * H) * 4       # (band specs are grid-invariant;
    out = 2 * LPW * 4                         #  tiny here, so default buffering)
    temps = 6 * (5 * H * LPW) * 4             # stats / row pass / wide / col / epilogue
    return img_blocks + bands + out + temps


def ssim_pallas(img1, img2, size_average=False):
    """Matches SSIM.forward: ssim_map.mean() if size_average else per-batch mean (B,)."""
    assert img1.shape == img2.shape
    B, C, H, W = img1.shape
    NP = B * C

    # Lane packing: LP planes share the 128-lane axis when W is small.
    LP = max(1, 128 // W) if W < 128 else 1
    NG = (NP + LP - 1) // LP
    NP_pad = NG * LP
    LPW = LP * W

    x1 = img1.astype(jnp.float32).reshape(NP, H, W)
    x2 = img2.astype(jnp.float32).reshape(NP, H, W)
    if NP_pad != NP:
        # zero planes give a finite ssim_map (== 1); they are sliced off below
        pad_cfg = ((0, NP_pad - NP), (0, 0), (0, 0))
        x1 = jnp.pad(x1, pad_cfg)
        x2 = jnp.pad(x2, pad_cfg)

    # (NP_pad, H, W) -> (NG, H, LP*W): layout plumbing so the kernel sees
    # lane-dense slabs (plane p of slab g occupies lanes [p*W, (p+1)*W)).
    def pack(x):
        return (x.reshape(NG, LP, H, W)
                 .transpose(0, 2, 1, 3)
                 .reshape(NG, H, LPW))

    x1p = pack(x1)
    x2p = pack(x2)

    gw = jnp.asarray(_block_diag_band(W, LP))   # (LPW, LPW)
    gh = jnp.asarray(_band_matrix(H))           # (H, H)

    img_spec = pl.BlockSpec((1, H, LPW), lambda g: (g, 0, 0))
    gw_spec = pl.BlockSpec((LPW, LPW), lambda g: (0, 0))
    gh_spec = pl.BlockSpec((H, H), lambda g: (0, 0))
    out_spec = pl.BlockSpec((1, 1, LPW), lambda g: (g, 0, 0))

    cp_kwargs = dict(dimension_semantics=("parallel",))
    est = _estimate_vmem_bytes(H, LPW)
    if est > 12 * 1024 * 1024:
        # Only needed for large H*W (esp. v5e's 16 MiB scoped default).
        cp_kwargs["vmem_limit_bytes"] = int(min(max(2 * est, 32 << 20), 96 << 20))

    col_sums = pl.pallas_call(
        _make_ssim_kernel(H, LPW),
        out_shape=jax.ShapeDtypeStruct((NG, 1, LPW), jnp.float32),
        grid_spec=pltpu.PrefetchScalarGridSpec(
            num_scalar_prefetch=0,
            grid=(NG,),
            in_specs=[img_spec, img_spec, gw_spec, gh_spec],
            out_specs=out_spec,
        ),
        compiler_params=pltpu.CompilerParams(**cp_kwargs),
    )(x1p, x2p, gw, gh)

    # (NG, 1, LPW) -> per-plane sums -> per-plane means.
    plane_sums = jnp.sum(col_sums.reshape(NG, LP, W), axis=-1).reshape(NP_pad)
    plane_means = plane_sums[:NP] / float(H * W)            # (B*C,)

    if size_average:
        return jnp.mean(plane_means)
    # size_average=False (module default): mean over (C, H, W) per batch element.
    return jnp.mean(plane_means.reshape(B, C), axis=1)


def _ssim_reference(img1, img2, size_average=False):
    """Pure-JAX reference (lax depthwise conv) for the correctness check."""
    B, C, H, W = img1.shape
    w = jnp.asarray(_WINDOW)[None, None]                       # (1,1,11,11)
    w = jnp.broadcast_to(w, (C, 1, WINDOW_SIZE, WINDOW_SIZE))  # depthwise

    def conv(x):
        return jax.lax.conv_general_dilated(
            x, w, window_strides=(1, 1), padding=[(PAD, PAD), (PAD, PAD)],
            dimension_numbers=("NCHW", "OIHW", "NCHW"), feature_group_count=C)

    mu1, mu2 = conv(img1), conv(img2)
    mu1_sq, mu2_sq, mu1_mu2 = mu1 * mu1, mu2 * mu2, mu1 * mu2
    sigma1_sq = conv(img1 * img1) - mu1_sq
    sigma2_sq = conv(img2 * img2) - mu2_sq
    sigma12 = conv(img1 * img2) - mu1_mu2
    ssim_map = ((2 * mu1_mu2 + C1) * (2 * sigma12 + C2)) / (
        (mu1_sq + mu2_sq + C1) * (sigma1_sq + sigma2_sq + C2))
    if size_average:
        return jnp.mean(ssim_map)
    return jnp.mean(ssim_map, axis=(1, 2, 3))


if __name__ == "__main__":
    key = jax.random.PRNGKey(0)
    k1, k2 = jax.random.split(key)
    B, C, H, W = 2, 4, 16, 16
    img1 = jax.random.uniform(k1, (B, C, H, W), dtype=jnp.float32)
    img2 = jax.random.uniform(k2, (B, C, H, W), dtype=jnp.float32)

    out = jax.block_until_ready(ssim_pallas(img1, img2, size_average=False))
    ref = jax.block_until_ready(_ssim_reference(img1, img2, size_average=False))

    assert out.shape == (B,)
    np.testing.assert_allclose(np.asarray(out), np.asarray(ref), rtol=1e-4, atol=1e-4)
    print("KERNEL_OK")
</pallas_src>

<mosaic_0001>
module attributes {stable_mosaic.version = 11 : i64} {
  func.func @kernel(%arg0: i32, %arg1: memref<1x16x128xf32, #tpu.memory_space<vmem>>, %arg2: memref<1x16x128xf32, #tpu.memory_space<vmem>>, %arg3: memref<128x128xf32, #tpu.memory_space<vmem>>, %arg4: memref<16x16xf32, #tpu.memory_space<vmem>>, %arg5: memref<1x1x128xf32, #tpu.memory_space<vmem>>) attributes {dimension_semantics = [#tpu.dimension_semantics<parallel>], iteration_bounds = array<i64: 1>, scalar_prefetch = 0 : i64, scratch_operands = 0 : i64, tpu.core_type = #tpu.core_type<tc>, window_params = [{transform_indices = @transform_0, window_bounds = array<i64: 1, 16, 128>}, {transform_indices = @transform_1, window_bounds = array<i64: 1, 16, 128>}, {pipeline_mode = #tpu.pipeline_mode<synchronous>, transform_indices = @transform_2, window_bounds = array<i64: 128, 128>}, {pipeline_mode = #tpu.pipeline_mode<synchronous>, transform_indices = @transform_3, window_bounds = array<i64: 16, 16>}, {transform_indices = @transform_4, window_bounds = array<i64: 1, 1, 128>}]} {
    %c0 = arith.constant 0 : index
    %c0_0 = arith.constant 0 : index
    %c0_1 = arith.constant 0 : index
    %0 = vector.load %arg1[%c0, %c0_0, %c0_1] : memref<1x16x128xf32, #tpu.memory_space<vmem>>, vector<1x16x128xf32>
    %1 = vector.shape_cast %0 : vector<1x16x128xf32> to vector<16x128xf32>
    %c0_2 = arith.constant 0 : index
    %c0_3 = arith.constant 0 : index
    %c0_4 = arith.constant 0 : index
    %2 = vector.load %arg2[%c0_2, %c0_3, %c0_4] : memref<1x16x128xf32, #tpu.memory_space<vmem>>, vector<1x16x128xf32>
    %3 = vector.shape_cast %2 : vector<1x16x128xf32> to vector<16x128xf32>
    %4 = arith.mulf %1, %1 : vector<16x128xf32>
    %5 = arith.mulf %3, %3 : vector<16x128xf32>
    %6 = arith.mulf %1, %3 : vector<16x128xf32>
    %7 = tpu.concatenate %1, %3, %4, %5, %6 in 0 : vector<16x128xf32>, vector<16x128xf32>, vector<16x128xf32>, vector<16x128xf32>, vector<16x128xf32> -> vector<80x128xf32>
    %c0_5 = arith.constant 0 : index
    %c0_6 = arith.constant 0 : index
    %8 = vector.load %arg3[%c0_5, %c0_6] : memref<128x128xf32, #tpu.memory_space<vmem>>, vector<128x128xf32>
    %cst = arith.constant dense<0.000000e+00> : vector<80x128xf32>
    %9 = tpu.matmul %7, %8, %cst {dimension_numbers = #tpu.dot_dimension_numbers<[1], [0], [0], [1], [0, 0, 1, 1], [], []>} : vector<80x128xf32>, vector<128x128xf32>, vector<80x128xf32> -> vector<80x128xf32>
    %10 = vector.extract_strided_slice %9 {offsets = [0, 0], sizes = [16, 128], strides = [1, 1]} : vector<80x128xf32> to vector<16x128xf32>
    %11 = vector.extract_strided_slice %9 {offsets = [16, 0], sizes = [16, 128], strides = [1, 1]} : vector<80x128xf32> to vector<16x128xf32>
    %12 = vector.extract_strided_slice %9 {offsets = [32, 0], sizes = [16, 128], strides = [1, 1]} : vector<80x128xf32> to vector<16x128xf32>
    %13 = vector.extract_strided_slice %9 {offsets = [48, 0], sizes = [16, 128], strides = [1, 1]} : vector<80x128xf32> to vector<16x128xf32>
    %14 = vector.extract_strided_slice %9 {offsets = [64, 0], sizes = [16, 128], strides = [1, 1]} : vector<80x128xf32> to vector<16x128xf32>
    %15 = tpu.concatenate %10, %11, %12, %13, %14 in 1 : vector<16x128xf32>, vector<16x128xf32>, vector<16x128xf32>, vector<16x128xf32>, vector<16x128xf32> -> vector<16x640xf32>
    %c0_7 = arith.constant 0 : index
    %c0_8 = arith.constant 0 : index
    %16 = vector.load %arg4[%c0_7, %c0_8] : memref<16x16xf32, #tpu.memory_space<vmem>>, vector<16x16xf32>
    %cst_9 = arith.constant dense<0.000000e+00> : vector<16x640xf32>
    %17 = tpu.matmul %16, %15, %cst_9 {dimension_numbers = #tpu.dot_dimension_numbers<[1], [0], [0], [1], [0, 0, 1, 1], [], []>} : vector<16x16xf32>, vector<16x640xf32>, vector<16x640xf32> -> vector<16x640xf32>
    %18 = vector.extract_strided_slice %17 {offsets = [0, 0], sizes = [16, 128], strides = [1, 1]} : vector<16x640xf32> to vector<16x128xf32>
    %19 = vector.extract_strided_slice %17 {offsets = [0, 128], sizes = [16, 128], strides = [1, 1]} : vector<16x640xf32> to vector<16x128xf32>
    %20 = vector.extract_strided_slice %17 {offsets = [0, 256], sizes = [16, 128], strides = [1, 1]} : vector<16x640xf32> to vector<16x128xf32>
    %21 = vector.extract_strided_slice %17 {offsets = [0, 384], sizes = [16, 128], strides = [1, 1]} : vector<16x640xf32> to vector<16x128xf32>
    %22 = vector.extract_strided_slice %17 {offsets = [0, 512], sizes = [16, 128], strides = [1, 1]} : vector<16x640xf32> to vector<16x128xf32>
    %23 = arith.mulf %18, %18 : vector<16x128xf32>
    %24 = arith.mulf %19, %19 : vector<16x128xf32>
    %25 = arith.mulf %18, %19 : vector<16x128xf32>
    %26 = arith.subf %20, %23 : vector<16x128xf32>
    %27 = arith.subf %21, %24 : vector<16x128xf32>
    %28 = arith.subf %22, %25 : vector<16x128xf32>
    %cst_10 = arith.constant 2.000000e+00 : f32
    %29 = vector.broadcast %cst_10 : f32 to vector<16x128xf32>
    %30 = arith.mulf %29, %25 : vector<16x128xf32>
    %cst_11 = arith.constant 9.99999974E-5 : f32
    %31 = vector.broadcast %cst_11 : f32 to vector<16x128xf32>
    %32 = arith.addf %30, %31 : vector<16x128xf32>
    %cst_12 = arith.constant 2.000000e+00 : f32
    %33 = vector.broadcast %cst_12 : f32 to vector<16x128xf32>
    %34 = arith.mulf %33, %28 : vector<16x128xf32>
    %cst_13 = arith.constant 8.99999984E-4 : f32
    %35 = vector.broadcast %cst_13 : f32 to vector<16x128xf32>
    %36 = arith.addf %34, %35 : vector<16x128xf32>
    %37 = arith.mulf %32, %36 : vector<16x128xf32>
    %38 = arith.addf %23, %24 : vector<16x128xf32>
    %cst_14 = arith.constant 9.99999974E-5 : f32
    %39 = vector.broadcast %cst_14 : f32 to vector<16x128xf32>
    %40 = arith.addf %38, %39 : vector<16x128xf32>
    %41 = arith.addf %26, %27 : vector<16x128xf32>
    %cst_15 = arith.constant 8.99999984E-4 : f32
    %42 = vector.broadcast %cst_15 : f32 to vector<16x128xf32>
    %43 = arith.addf %41, %42 : vector<16x128xf32>
    %44 = arith.mulf %40, %43 : vector<16x128xf32>
    %45 = arith.divf %37, %44 : vector<16x128xf32>
    %cst_16 = arith.constant dense<0.000000e+00> : vector<128xf32>
    %46 = vector.multi_reduction <add>, %45, %cst_16 [0] : vector<16x128xf32> to vector<128xf32>
    %47 = vector.shape_cast %46 : vector<128xf32> to vector<1x128xf32>
    %c0_17 = arith.constant 0 : index
    %c0_18 = arith.constant 0 : index
    %c0_19 = arith.constant 0 : index
    %48 = vector.load %arg5[%c0_17, %c0_18, %c0_19] : memref<1x1x128xf32, #tpu.memory_space<vmem>>, vector<1x1x128xf32>
    %49 = vector.shape_cast %48 : vector<1x1x128xf32> to vector<1x128xf32>
    %50 = vector.shape_cast %47 : vector<1x128xf32> to vector<1x1x128xf32>
    tpu.vector_store %arg5[%c0_17, %c0_18, %c0_19], %50 {strides = array<i32>} : memref<1x1x128xf32, #tpu.memory_space<vmem>>, vector<1x1x128xf32>,
    return
  }
  func.func @transform_0(%arg0: i32) -> (i32, i32, i32) {
    %c0_i32 = arith.constant 0 : i32
    %c0_i32_0 = arith.constant 0 : i32
    %c0_i32_1 = arith.constant 0 : i32
    return %arg0, %c0_i32, %c0_i32_0 : i32, i32, i32
  }
  func.func @transform_1(%arg0: i32) -> (i32, i32, i32) {
    %c0_i32 = arith.constant 0 : i32
    %c0_i32_0 = arith.constant 0 : i32
    %c0_i32_1 = arith.constant 0 : i32
    return %arg0, %c0_i32, %c0_i32_0 : i32, i32, i32
  }
  func.func @transform_2(%arg0: i32) -> (i32, i32) {
    %c0_i32 = arith.constant 0 : i32
    %c0_i32_0 = arith.constant 0 : i32
    %c0_i32_1 = arith.constant 0 : i32
    return %c0_i32, %c0_i32_0 : i32, i32
  }
  func.func @transform_3(%arg0: i32) -> (i32, i32) {
    %c0_i32 = arith.constant 0 : i32
    %c0_i32_0 = arith.constant 0 : i32
    %c0_i32_1 = arith.constant 0 : i32
    return %c0_i32, %c0_i32_0 : i32, i32
  }
  func.func @transform_4(%arg0: i32) -> (i32, i32, i32) {
    %c0_i32 = arith.constant 0 : i32
    %c0_i32_0 = arith.constant 0 : i32
    %c0_i32_1 = arith.constant 0 : i32
    return %arg0, %c0_i32, %c0_i32_0 : i32, i32, i32
  }
}

</mosaic_0001>

<bundles_post_ra>
// kernel: tpu_custom_call.1
= control target key start
LH: loop header
LB: loop body
LE: loop exit
PB: predicated region body
PF: predicated region fallthrough
CT: control target
= control target key end

     0   :  { %9 = vsyncpa [#allocation3], 0  ;;  %s902_s0 = inlined_call_operand.hbm [shape: f32[1,16,128], index: 0, kind: input, shape index: {}]   ;;  %s903_s1 = inlined_call_operand.hbm [shape: f32[1,16,128], index: 1, kind: input, shape index: {}]   ;;  %s904_s2 = inlined_call_operand.hbm [shape: f32[128,128], index: 2, kind: input, shape index: {}]   ;;  %s905_s3 = inlined_call_operand.hbm [shape: f32[16,16], index: 3, kind: input, shape index: {}]   ;;  %s906_s4 = inlined_call_operand.hbm [shape: f32[1,1,128], index: 4, kind: output, shape index: {}]  }
   0x1   :  { %10 = vsyncpa [#allocation6], 0 }
   0x2   :  { %11 = vsyncpa [#allocation9], 0 }
   0x3   :  { %12 = vsyncpa [#allocation4], 0  ;;  %s777_s15 = smov [#allocation5]   ;;  %s778_s17 = smov [#allocation2]  }
   0x4   :  { %s30_s16 = sshll.u32 %s777_s15, 4  ;;  %s18_s18 = sshll.u32 %s778_s17, 4  ;;  %s31_s16 = int_to_ptr.vmem [resolvable:$true] %s30_s16  ;;  %s810_s18 = int_to_ptr.vmem [resolvable:$true] %s18_s18 }
   0x5   :  { %s659_s21 = scalar_lea.hbm %s903_s1, 256 }
   0x6   :  { %p660_p0 = scmp.ne.s32.totalorder %s903_s1, %s659_s21  ;;  %p663_p1 = scmp.lt.u32.totalorder %s659_s21, %s903_s1 }
   0x8   :  { %p665_p2 = pnand %p663_p1, %p660_p0 }
   0xa   :  { %668 = shalt.err (!%p665_p2)
}
   0xb   :  { %s669_s26 = scalar_lea.vmem %s31_s16, 256  ;;  %p674_p4 = scmp.lt.s32.totalorder %s31_s16, %s31_s16 }
   0xc   :  { %p670_p3 = scmp.ne.s32.totalorder %s31_s16, %s669_s26  ;;  %p675_p5 = scmp.lt.s32.totalorder %s669_s26, %s669_s26 }
   0xe   :  { %p676_p6 = por %p675_p5, %p674_p4 }
  0x10   :  { %p677_p7 = pnand %p676_p6, %p670_p3 }
  0x12   :  { %680 = shalt.err (!%p677_p7)
}
  0x13   :  { %s779_s27 = smov 128   ;;  %s780_s28 = smov 8  }
  0x14   :  { %36 = dma.hbm_to_vmem [thread:$0]  %s903_s1, 256, %s31_s16, [#allocation6], %s779_s27, %s779_s27, %s780_s28  }
  0x15   :  { %s681_s7 = scalar_lea.hbm %s902_s0, 256 }
  0x16   :  { %p682_p8 = scmp.ne.s32.totalorder %s902_s0, %s681_s7  ;;  %p685_p9 = scmp.lt.u32.totalorder %s681_s7, %s902_s0 }
  0x18   :  { %p687_p10 = pnand %p685_p9, %p682_p8 }
  0x1a   :  { %690 = shalt.err (!%p687_p10)
}
  0x1b   :  { %s691_s12 = scalar_lea.vmem %s810_s18, 256  ;;  %p696_p12 = scmp.lt.s32.totalorder %s810_s18, %s810_s18 }
  0x1c   :  { %p692_p11 = scmp.ne.s32.totalorder %s810_s18, %s691_s12  ;;  %p697_p13 = scmp.lt.s32.totalorder %s691_s12, %s691_s12 }
  0x1e   :  { %p698_p0 = por %p697_p13, %p696_p12 }
  0x20   :  { %p699_p1 = pnand %p698_p0, %p692_p11 }
  0x22   :  { %702 = shalt.err (!%p699_p1)
}
  0x23   :  { %24 = dma.hbm_to_vmem [thread:$0]  %s902_s0, 256, %s810_s18, [#allocation3], %s779_s27, %s779_s27, %s780_s28  }
  0x24   :  { %s781_s14 = smov [#allocation7]   ;;  %s782_s16 = smov [#allocation8]  }
  0x25   :  { %s42_s15 = sshll.u32 %s781_s14, 4  ;;  %s54_s17 = sshll.u32 %s782_s16, 4  ;;  %s43_s15 = int_to_ptr.vmem [resolvable:$true] %s42_s15  ;;  %s847_s17 = int_to_ptr.vmem [resolvable:$true] %s54_s17 }
  0x26   :  { %s703_s21 = scalar_lea.hbm %s904_s2, 2048 }
  0x27   :  { %p704_p2 = scmp.ne.s32.totalorder %s904_s2, %s703_s21  ;;  %p707_p3 = scmp.lt.u32.totalorder %s703_s21, %s904_s2 }
  0x29   :  { %p709_p4 = pnand %p707_p3, %p704_p2 }
  0x2b   :  { %712 = shalt.err (!%p709_p4)
}
  0x2c   :  { %s713_s0 = scalar_lea.vmem %s43_s15, 2048  ;;  %p718_p6 = scmp.lt.s32.totalorder %s43_s15, %s43_s15 }
  0x2d   :  { %p714_p5 = scmp.ne.s32.totalorder %s43_s15, %s713_s0  ;;  %p719_p7 = scmp.lt.s32.totalorder %s713_s0, %s713_s0 }
  0x2f   :  { %p720_p8 = por %p719_p7, %p718_p6 }
  0x31   :  { %p721_p9 = pnand %p720_p8, %p714_p5 }
  0x33   :  { %724 = shalt.err (!%p721_p9)
}
  0x34   :  { %48 = dma.hbm_to_vmem [thread:$0]  %s904_s2, 2048, %s43_s15, [#allocation6], %s779_s27, %s779_s27, %s780_s28  }
  0x35   :  { %s725_s5 = scalar_lea.hbm %s905_s3, 256 }
  0x36   :  { %p726_p10 = scmp.ne.s32.totalorder %s905_s3, %s725_s5  ;;  %p729_p11 = scmp.lt.u32.totalorder %s725_s5, %s905_s3 }
  0x38   :  { %p731_p12 = pnand %p729_p11, %p726_p10 }
  0x3a   :  { %734 = shalt.err (!%p731_p12)
}
  0x3b   :  { %s735_s10 = scalar_lea.vmem %s847_s17, 256  ;;  %p740_p0 = scmp.lt.s32.totalorder %s847_s17, %s847_s17 }
  0x3c   :  { %p736_p13 = scmp.ne.s32.totalorder %s847_s17, %s735_s10  ;;  %p741_p1 = scmp.lt.s32.totalorder %s735_s10, %s735_s10 }
  0x3e   :  { %p742_p2 = por %p741_p1, %p740_p0 }
  0x40   :  { %p743_p3 = pnand %p742_p2, %p736_p13 }
  0x42   :  { %746 = shalt.err (!%p743_p3)
}
  0x43   :  { %60 = dma.hbm_to_vmem [thread:$0]  %s905_s3, 256, %s847_s17, [#allocation9], %s779_s27, %s779_s27, %s780_s28  }
  0x44   :  { %769 = dma.done.wait [#allocation3], 256  }
  0x45   :  { %770 = vsyncadd [#allocation3], 4294967040 }
  0x46   :  { %771 = dma.done.wait [#allocation6], 2304  }
  0x47   :  { %772 = vsyncadd [#allocation6], 4294964992 }
  0x48   :  { %773 = dma.done.wait [#allocation9], 256  }
  0x49   :  { %774 = vsyncadd [#allocation9], 4294967040  ;;  %v83_v0 = vld [vmem:[#allocation7] sm:$0xff]  ;;  %v84_v1 = vld [vmem:[#allocation7 + $0x8] sm:$0xff]  ;;  %v783_v34 = vmov 0.0   ;;  %vm216_vm0 = vcmask 130048  }
  0x4a   :  { %v85_v2 = vld [vmem:[#allocation7 + $0x10] sm:$0xff]  ;;  %v603_v3 = vpack.c.bf16 %v84_v1, %v83_v0  ;;  %v86_v4 = vld [vmem:[#allocation7 + $0x18] sm:$0xff]  ;;  %v87_v6 = vld [vmem:[#allocation7 + $0x20] sm:$0xff]  ;;  %287 = vmatprep.mubr.f32.mxu1 %v783_v34  ;;  %s784_s3 = smov [#allocation10]  }
  0x4b   :  { %v607_v5 = vpack.c.bf16 %v86_v4, %v85_v2  ;;  %v88_v7 = vld [vmem:[#allocation7 + $0x28] sm:$0xff]  ;;  %v73_v9 = vld [vmem:[#allocation2] sm:$0xff]  ;;  %v89_v10 = vld [vmem:[#allocation7 + $0x30] sm:$0xff]  ;;  %s502_s27 = sshll.u32 %s784_s3, 4  ;;  %s503_s27 = int_to_ptr.vmem [resolvable:$true] %s502_s27 }
  0x4c   :  { %604 = vmatprep.subr.bf16.mxu0 %v603_v3  ;;  %v611_v8 = vpack.c.bf16 %v88_v7, %v87_v6  ;;  %v90_v11 = vld [vmem:[#allocation7 + $0x38] sm:$0xff]  ;;  %581 = vmatprep.mubr.f32.mxu0 %v73_v9  ;;  %v91_v13 = vld [vmem:[#allocation7 + $0x40] sm:$0xff]  ;;  %v92_v14 = vld [vmem:[#allocation7 + $0x48] sm:$0xff]  ;;  %v77_v28 = vmul.f32 %v73_v9, %v73_v9  ;;  %s747_s28 = scalar_lea.vmem %s503_s27, 16  ;;  %s751_s12 = scalar_lea.vmem %s503_s27, 32 }
  0x4d   :  { %606 = vmatpush3.bf16.msra.mxu0 %v603_v3  ;;  %v615_v12 = vpack.c.bf16 %v90_v11, %v89_v10  ;;  %v619_v15 = vpack.c.bf16 %v92_v14, %v91_v13  ;;  %v93_v16 = vld [vmem:[#allocation7 + $0x50] sm:$0xff]  ;;  %v94_v17 = vld [vmem:[#allocation7 + $0x58] sm:$0xff]  ;;  %v95_v19 = vld [vmem:[#allocation7 + $0x60] sm:$0xff]  ;;  %p748_p4 = scmp.ne.s32.totalorder %s503_s27, %s747_s28  ;;  %p752_p5 = scmp.lt.s32.totalorder %s503_s27, %s503_s27 }
  0x4e   :  { %608 = vmatprep.subr.bf16.mxu0 %v607_v5  ;;  %v623_v18 = vpack.c.bf16 %v94_v17, %v93_v16  ;;  %v96_v20 = vld [vmem:[#allocation7 + $0x68] sm:$0xff]  ;;  %v97_v22 = vld [vmem:[#allocation7 + $0x70] sm:$0xff]  ;;  %v98_v23 = vld [vmem:[#allocation7 + $0x78] sm:$0xff]  ;;  %p753_p6 = scmp.lt.s32.totalorder %s751_s12, %s747_s28 }
  0x4f   :  { %v627_v21 = vpack.c.bf16 %v96_v20, %v95_v19  ;;  %v631_v24 = vpack.c.bf16 %v98_v23, %v97_v22  ;;  %v74_v25 = vld [vmem:[#allocation2 + $0x8] sm:$0xff]  ;;  %v75_v26 = vld [vmem:[#allocation5] sm:$0xff]  ;;  %v76_v27 = vld [vmem:[#allocation5 + $0x8] sm:$0xff] }
  0x50   :  { %v78_v29 = vmul.f32 %v74_v25, %v74_v25  ;;  %v79_v30 = vmul.f32 %v75_v26, %v75_v26  ;;  %v80_v31 = vmul.f32 %v76_v27, %v76_v27  ;;  %v81_v32 = vmul.f32 %v75_v26, %v73_v9  ;;  %v214_v43 = vld [vmem:[#allocation8] sm:$0xff]  ;;  %v215_v47 = vld [vmem:[#allocation8 + $0x8] sm:$0xff]  ;;  %p754_p7 = por %p753_p6, %p752_p5 }
  0x51   :  { %610 = vmatpush3.bf16.msra.mxu0 %v607_v5  ;;  %v82_v33 = vmul.f32 %v76_v27, %v74_v25 }
  0x52   :  { %612 = vmatprep.subr.bf16.mxu0 %v611_v8  ;;  %p755_p8 = pnand %p754_p7, %p748_p4 }
  0x55   :  { %614 = vmatpush3.bf16.msra.mxu0 %v611_v8 }
  0x56   :  { %616 = vmatprep.subr.bf16.mxu0 %v615_v12 }
  0x59   :  { %618 = vmatpush3.bf16.msra.mxu0 %v615_v12 }
  0x5a   :  { %620 = vmatprep.subr.bf16.mxu0 %v619_v15 }
  0x5d   :  { %622 = vmatpush3.bf16.msra.mxu0 %v619_v15 }
  0x5e   :  { %624 = vmatprep.subr.bf16.mxu0 %v623_v18 }
  0x61   :  { %626 = vmatpush3.bf16.msra.mxu0 %v623_v18 }
  0x62   :  { %628 = vmatprep.subr.bf16.mxu0 %v627_v21 }
  0x65   :  { %630 = vmatpush3.bf16.msra.mxu0 %v627_v21 }
  0x66   :  { %632 = vmatprep.subr.bf16.mxu0 %v631_v24 }
  0x69   :  { %634 = vmatpush3.bf16.msra.mxu0 %v631_v24 }
  0x6c   :  { %582 = vmatmul.mubr.f32.vlgmr.msra.gmra.mrb[0].mxu0 %v74_v25 }
  0x6d   :  { %584 = vmatprep.mubr.f32.mxu0 %v75_v26 }
  0x70   :  { %585 = vmatmul.mubr.f32.gmra.mrb[2].mxu0 %v76_v27 }
  0x71   :  { %587 = vmatprep.mubr.f32.mxu0 %v77_v28 }
  0x74   :  { %588 = vmatmul.mubr.f32.gmra.mrb[4].mxu0 %v78_v29 }
  0x75   :  { %590 = vmatprep.mubr.f32.mxu0 %v79_v30 }
  0x78   :  { %591 = vmatmul.mubr.f32.gmra.mrb[6].mxu0 %v80_v31 }
  0x79   :  { %593 = vmatprep.mubr.f32.mxu0 %v81_v32 }
  0x7c   :  { %594 = vmatmul.mubr.f32.gmra.mrb[8].mxu0 %v82_v33 }
 0x13f   :  { %v583_v35 = vpop.f32.mrb[0].mxu0 }
 0x140   :  { %v165_v36 = vpop.f32.mrb[1].mxu0 }
 0x141   :  { %v637_v37 = vpack.c.bf16 %v583_v35, %v165_v36 }
 0x143   :  { %v586_v38 = vpop.f32.mrb[2].mxu0 }
 0x144   :  { %v175_v39 = vpop.f32.mrb[3].mxu0 }
 0x145   :  { %v635_v40 = vpack.c.bf16 %v586_v38, %v175_v39 }
 0x147   :  { %v589_v41 = vpop.f32.mrb[4].mxu0  ;;  %636 = vmatprep.subr.bf16.mxu1 %v635_v40 }
 0x148   :  { %v185_v42 = vpop.f32.mrb[5].mxu0  ;;  %638 = vmatpush1.bf16.msra.mxu1 %v637_v37 }
 0x149   :  { %v641_v44 = vpack.c.bf16 %v589_v41, %v185_v42 }
 0x14b   :  { %v592_v45 = vpop.f32.mrb[6].mxu0  ;;  %513 = vmatmul.mubr.msk.f32.vlgmr.msra.gmra.mrb[0].mxu1 %vm216_vm0, %v214_v43 }
 0x14c   :  { %v195_v46 = vpop.f32.mrb[7].mxu0  ;;  %293 = vmatprep.mubr.f32.mxu1 %v783_v34 }
 0x14d   :  { %v639_v48 = vpack.c.bf16 %v592_v45, %v195_v46 }
 0x14f   :  { %514 = vmatmul.mubr.msk.f32.gmra.mrb[2].mxu1 %vm216_vm0, %v215_v47  ;;  %640 = vmatprep.subr.bf16.mxu1 %v639_v48  ;;  %v595_v49 = vpop.f32.mrb[8].mxu0 }
 0x150   :  { %642 = vmatpush1.bf16.msra.mxu1 %v641_v44  ;;  %364 = vmatprep.mubr.f32.mxu1 %v783_v34  ;;  %v205_v50 = vpop.f32.mrb[9].mxu0 }
 0x151   :  { %v643_v51 = vpack.c.bf16 %v595_v49, %v205_v50 }
 0x153   :  { %515 = vmatmul.mubr.msk.f32.vlgmr.msra.gmra.mrb[4].mxu1 %vm216_vm0, %v214_v43  ;;  %644 = vmatprep.subr.bf16.mxu1 %v643_v51 }
 0x154   :  { %370 = vmatprep.mubr.f32.mxu1 %v783_v34  ;;  %646 = vmatpush3.bf16.msra.mxu1 %v643_v51 }
 0x157   :  { %516 = vmatmul.mubr.msk.f32.gmra.mrb[6].mxu1 %vm216_vm0, %v215_v47 }
 0x158   :  { %600 = vmatprep.mubr.msk.f32.mxu1 %vm216_vm0, %v214_v43 }
 0x15b   :  { %601 = vmatmul.mubr.msk.f32.vlgmr.msra.gmra.mrb[8].mxu1 %vm216_vm0, %v215_v47 }
 0x21e   :  { %v289_v52 = vpop.f32.mrb[0].mxu1 }
 0x21f   :  { %v452_v53 = vmul.f32 %v289_v52, %v289_v52  ;;  %v291_v54 = vpop.f32.mrb[1].mxu1 }
 0x220   :  { %v454_v55 = vmul.f32 %v291_v54, %v291_v54  ;;  %v456_v56 = vmul.f32 %v291_v54, %v289_v52 }
 0x222   :  { %v474_v57 = vadd.f32 %v454_v55, %v452_v53  ;;  %v295_v58 = vpop.f32.mrb[2].mxu1  ;;  %v464_v14 = vmul.f32 2.0, %v456_v56 }
 0x223   :  { %v453_v59 = vmul.f32 %v295_v58, %v295_v58  ;;  %v297_v60 = vpop.f32.mrb[3].mxu1 }
 0x224   :  { %v455_v61 = vmul.f32 %v297_v60, %v297_v60  ;;  %v457_v62 = vmul.f32 %v297_v60, %v295_v58  ;;  %v476_v8 = vadd.f32 0.0001, %v474_v57  ;;  %v466_v26 = vadd.f32 0.0001, %v464_v14 }
 0x226   :  { %v475_v63 = vadd.f32 %v455_v61, %v453_v59  ;;  %v366_v0 = vpop.f32.mrb[4].mxu1  ;;  %v465_v15 = vmul.f32 2.0, %v457_v62 }
 0x227   :  { %v458_v1 = vsub.f32 %v366_v0, %v452_v53  ;;  %v368_v2 = vpop.f32.mrb[5].mxu1 }
 0x228   :  { %v460_v3 = vsub.f32 %v368_v2, %v454_v55  ;;  %v477_v18 = vadd.f32 0.0001, %v475_v63  ;;  %v467_v24 = vadd.f32 0.0001, %v465_v15 }
 0x22a   :  { %v478_v4 = vadd.f32 %v460_v3, %v458_v1  ;;  %v372_v5 = vpop.f32.mrb[6].mxu1 }
 0x22b   :  { %v459_v6 = vsub.f32 %v372_v5, %v453_v59  ;;  %v374_v7 = vpop.f32.mrb[7].mxu1 }
 0x22c   :  { %v480_v9 = vadd.f32 0.0009, %v478_v4  ;;  %v461_v10 = vsub.f32 %v374_v7, %v455_v61 }
 0x22e   :  { %v482_v11 = vmul.f32 %v480_v9, %v476_v8  ;;  %v479_v12 = vadd.f32 %v461_v10, %v459_v6  ;;  %v602_v13 = vpop.f32.mrb[8].mxu1 }
 0x22f   :  { %v463_v16 = vsub.f32 %v602_v13, %v457_v62  ;;  %v443_v17 = vpop.f32.mrb[9].mxu1 }
 0x230   :  { %655 = vrcp.f32 %v482_v11  ;;  %v481_v19 = vadd.f32 0.0009, %v479_v12  ;;  %v462_v20 = vsub.f32 %v443_v17, %v456_v56 }
 0x231   :  { %v469_v21 = vmul.f32 2.0, %v463_v16 }
 0x232   :  { %v483_v22 = vmul.f32 %v481_v19, %v477_v18  ;;  %v468_v23 = vmul.f32 2.0, %v462_v20 }
 0x233   :  { %v471_v25 = vadd.f32 0.0009, %v469_v21 }
 0x234   :  { %657 = vrcp.f32 %v483_v22  ;;  %v470_v27 = vadd.f32 0.0009, %v468_v23 }
 0x235   :  { %v473_v28 = vmul.f32 %v471_v25, %v467_v24 }
 0x236   :  { %v472_v29 = vmul.f32 %v470_v27, %v466_v26 }
 0x23a   :  { %v656_v30 = vpop.eup %655 }
 0x23b   :  { %v485_v31 = vmul.f32 %v656_v30, %v472_v29 }
 0x23e   :  { %v658_v32 = vpop.eup %657 }
 0x23f   :  { %v487_v33 = vmul.f32 %v658_v32, %v473_v28 }
 0x241   :  { %v488_v34 = vadd.f32 %v487_v33, %v485_v31 }
 0x243   :  { %v489_v35 = vrot.slane %v488_v34, 4 }
 0x245   :  { %v490_v36 = vadd.f32 %v489_v35, %v488_v34 }
 0x247   :  { %v491_v37 = vrot.slane %v490_v36, 2 }
 0x249   :  { %v492_v38 = vadd.f32 %v491_v37, %v490_v36 }
 0x24b   :  { %v493_v39 = vrot.slane %v492_v38, 1 }
 0x24d   :  { %v494_v40 = vadd.f32 %v493_v39, %v492_v38 }
 0x24f   :  { %495 = vst [vmem:[#allocation10] sm:$0x1] %v494_v40 }
 0x250   :  { %758 = shalt.err (!%p755_p8)
}
 0x251   :  { %s759_s14 = scalar_lea.hbm %s906_s4, 16 }
 0x252   :  { %p760_p9 = scmp.ne.s32.totalorder %s906_s4, %s759_s14  ;;  %p763_p10 = scmp.lt.u32.totalorder %s759_s14, %s906_s4 }
 0x254   :  { %p765_p11 = pnand %p763_p10, %p760_p9 }
 0x256   :  { %768 = shalt.err (!%p765_p11)
}
 0x257   :  { %505 = dma.vmem_to_hbm [thread:$0]  %s503_s27, 16, %s906_s4, [#allocation4]  }
 0x258   :  { %775 = dma.done.wait [#allocation4], 16  }
 0x259   :  { %776 = vsyncadd [#allocation4], 4294967280 }
 0x25a   :  { %509 = vsyncpa [#allocation3], 1 }
 0x25b   :  { %510 = vsyncpa [#allocation6], 1 }
 0x25c   :  { %511 = vsyncpa [#allocation9], 1 }
 0x25d   :  { %512 = vsyncpa [#allocation4], 1 }

</bundles_post_ra>
